<compile_context>
chip_gen: v7x
topology: tpu7x:2x2x1
jax: 0.10.0
libtpu: 0.0.40
codegen_flags: <defaults>
</compile_context>

<pallas_src>
import functools

import jax
import jax.numpy as jnp
from jax.experimental import pallas as pl
from jax.experimental.pallas import tpu as pltpu


def _ar_kernel(*refs, ar_order, has_halo):
    """One (batch_tile, L_tile) grid step.

    refs (has_halo=True):  x_ref (BT,K,TL), xh_ref (BT,K,128), w_ref (K,R*K),
                           b_ref (K,1), o_ref (BT,K,TL)
    refs (has_halo=False): x_ref, w_ref, b_ref, o_ref   (single L tile)
    """
    if has_halo:
        x_ref, xh_ref, w_ref, b_ref, o_ref = refs
    else:
        x_ref, w_ref, b_ref, o_ref = refs
        xh_ref = None

    R = ar_order
    bt, k_dim, tl = x_ref.shape

    x_cur = x_ref[...]
    if has_halo:
        left = xh_ref[...]                                   # previous 128 columns
    else:
        lw = 128 * pl.cdiv(R, 128)
        left = jnp.zeros((bt, k_dim, lw), dtype=x_cur.dtype)  # zeros feed masked lanes
    off = left.shape[-1]

    # [left | current] along lanes; built ONCE per step for all batch rows.
    xa = jnp.concatenate([left, x_cur], axis=-1)             # (BT, K, off+TL)

    # R lag-shifted operands (lag d = R - r), stacked along the contraction
    # (sublane) axis so all taps fuse into a single matmul per batch row.
    shifted = [xa[..., off - (R - r): off - (R - r) + tl] for r in range(R)]
    xs = shifted[0] if R == 1 else jnp.concatenate(shifted, axis=1)  # (BT, R*K, TL)

    w = w_ref[...]                                           # (K, R*K)
    bias = b_ref[...].astype(jnp.float32)                    # (K, 1), broadcast on lanes

    outs = [
        jnp.dot(w, xs[bb], preferred_element_type=jnp.float32) + bias
        for bb in range(bt)
    ]

    j = pl.program_id(1)

    @pl.when(j == 0)
    def _():  # only the first L tile contains t < R -> pay for the mask only here
        valid = jax.lax.broadcasted_iota(jnp.int32, (k_dim, tl), 1) >= R
        for bb in range(bt):
            o_ref[bb] = jnp.where(valid, outs[bb], 0.0).astype(o_ref.dtype)

    @pl.when(j != 0)
    def _():
        for bb in range(bt):
            o_ref[bb] = outs[bb].astype(o_ref.dtype)


def _vmem_budget_bytes():
    """~75% of physical VMEM (=> ~96 MiB on v5e/v6e, ~48 MiB on v7x)."""
    cap = 64 << 20
    try:
        cap = int(getattr(pltpu.get_tpu_info(), "vmem_capacity_bytes", cap))
    except Exception:
        pass
    return (cap * 3) // 4


def ar_model_forward(x, W, bias, ar_order=1, *, tl_max=2048, compute_dtype=None):
    """x: (B, K, L) (PyTorch axis convention).  W: (K, K*ar_order), bias: (K,)."""
    B, K, L = x.shape
    R = int(ar_order)
    assert R >= 1 and W.shape == (K, K * R) and bias.shape == (K,)
    assert L > R, "sequence length must exceed ar_order"
    out_dtype = x.dtype

    cdt = jnp.dtype(compute_dtype if compute_dtype is not None else x.dtype)
    isz = cdt.itemsize
    out_isz = jnp.dtype(out_dtype).itemsize

    # Storage cast happens in the wrapper so HBM/DMA bytes actually shrink for
    # bf16; accumulation stays f32 inside the kernel.
    x_c = x.astype(cdt)
    # W[o, k*R + r] -> fused layout W_f[o, r*K + k] (pairs with sublane-stacked taps).
    w_f = jnp.transpose(W.reshape(K, K, R), (0, 2, 1)).reshape(K, R * K).astype(cdt)
    b2 = bias.reshape(K, 1).astype(jnp.float32)

    budget = _vmem_budget_bytes()

    # ---- L tile -------------------------------------------------------------
    tl_max = max(128, (tl_max // 128) * 128)
    if L <= tl_max:
        tl, halo = L, 0                       # single L tile: no halo re-read of x
    else:
        tl, halo = tl_max, 128
        assert R <= 128, "ar_order must be <= 128 for the tiled-L path"

    def vmem_need(bt_, tl_):
        tile = bt_ * K * tl_
        pipe = (2 * (tile * isz + tile * out_isz + bt_ * K * halo * isz)
                + 2 * K * R * K * isz)
        temps = (R + 2) * tile * isz + tile * 4    # xa/xs copies + f32 accumulators
        return pipe + temps + (1 << 20)

    # ---- batch tile: target ~2 MiB per-step x tile, divisor of B, fits VMEM --
    bt = max(1, min(B, (2 << 20) // max(1, K * tl * isz)))
    while B % bt:
        bt -= 1
    while bt > 1 and vmem_need(bt, tl) > budget:
        bt -= 1
        while B % bt:
            bt -= 1
    while halo and tl > 256 and vmem_need(bt, tl) > budget:
        tl -= 128

    nt = pl.cdiv(L, tl)
    nb = B // bt
    if nb * nt == 1 and B > 1:                # v7x: give both TensorCores work
        bt = max(1, B // 2)
        while B % bt:
            bt -= 1
        nb = B // bt

    step = (tl // 128) if halo else 0
    kernel = functools.partial(_ar_kernel, ar_order=R, has_halo=bool(halo))

    in_specs = [pl.BlockSpec((bt, K, tl), lambda i, j: (i, 0, j))]
    args = [x_c]
    if halo:
        # Previous 128 columns; clamped to block 0 for j == 0 where it only
        # feeds lanes with t < R which are masked anyway (requires R <= 128).
        in_specs.append(pl.BlockSpec(
            (bt, K, halo), lambda i, j: (i, 0, jnp.maximum(j * step - 1, 0))))
        args.append(x_c)
    in_specs += [pl.BlockSpec((K, R * K), lambda i, j: (0, 0)),
                 pl.BlockSpec((K, 1), lambda i, j: (0, 0))]
    args += [w_f, b2]

    vmem_limit = int(min(max(2 * vmem_need(bt, tl), 32 << 20), budget))

    # TODO(synk): K (input_dim) is not tiled; very large K needs a K-tile grid
    # axis + f32 accumulator scratch so the (K, R*K) weights / tiles fit v7x's
    # 64 MiB VMEM.
    return pl.pallas_call(
        kernel,
        out_shape=jax.ShapeDtypeStruct((B, K, L), out_dtype),
        grid=(nb, nt),
        in_specs=in_specs,
        out_specs=pl.BlockSpec((bt, K, tl), lambda i, j: (i, 0, j)),
        compiler_params=pltpu.CompilerParams(
            dimension_semantics=("parallel", "parallel"),
            vmem_limit_bytes=vmem_limit,
        ),
    )(*args)


def _reference(x, W, bias, ar_order):
    """Direct port of the PyTorch forward (per-timestep loop)."""
    B, K, L = x.shape
    R = ar_order
    outs = []
    for t in range(R, L):
        x_ar = x[:, :, t - R:t].reshape(B, K * R)   # k-major, r-minor (== torch .view)
        outs.append(x_ar @ W.T + bias)
    out = jnp.stack(outs, axis=2)
    pad = jnp.zeros((B, K, R), out.dtype)
    return jnp.concatenate([pad, out], axis=2)


if __name__ == "__main__":
    # ---- Test 1: nominal small shape, ar_order=1 (single-L-tile path) ------
    B, K, L, R = 2, 8, 16, 1
    kx, kw, kb = jax.random.split(jax.random.PRNGKey(0), 3)
    x = jax.random.normal(kx, (B, K, L), dtype=jnp.float32)
    W = jax.random.normal(kw, (K, K * R), dtype=jnp.float32) * 0.1
    bias = jax.random.normal(kb, (K,), dtype=jnp.float32) * 0.1
    out = jax.block_until_ready(ar_model_forward(x, W, bias, R))
    ref = _reference(x, W, bias, R)
    assert out.shape == (B, K, L)
    assert jnp.allclose(out, ref, atol=2e-3, rtol=2e-3), "test1 mismatch"

    # ---- Test 2: tiled-L path (halo across tiles), R > 1, ragged L ---------
    B2, K2, L2, R2 = 2, 8, 200, 3
    k2 = jax.random.split(jax.random.PRNGKey(1), 3)
    x2 = jax.random.normal(k2[0], (B2, K2, L2), dtype=jnp.float32)
    W2 = jax.random.normal(k2[1], (K2, K2 * R2), dtype=jnp.float32) * 0.1
    b2 = jax.random.normal(k2[2], (K2,), dtype=jnp.float32) * 0.1
    out2 = jax.block_until_ready(ar_model_forward(x2, W2, b2, R2, tl_max=128))
    ref2 = _reference(x2, W2, b2, R2)
    assert out2.shape == (B2, K2, L2)
    assert jnp.allclose(out2, ref2, atol=2e-3, rtol=2e-3), "test2 mismatch"

    # ---- Test 3: bf16 storage/compute (f32 accumulation), batch-tiled grid -
    B3, K3, L3, R3 = 4, 16, 64, 2
    k3 = jax.random.split(jax.random.PRNGKey(2), 3)
    x3 = jax.random.normal(k3[0], (B3, K3, L3), dtype=jnp.float32)
    W3 = jax.random.normal(k3[1], (K3, K3 * R3), dtype=jnp.float32) * 0.1
    b3 = jax.random.normal(k3[2], (K3,), dtype=jnp.float32) * 0.1
    out3 = jax.block_until_ready(
        ar_model_forward(x3, W3, b3, R3, compute_dtype=jnp.bfloat16))
    # Reference on bf16-rounded operands (kernel rounds x/W to bf16, accumulates f32).
    ref3 = _reference(x3.astype(jnp.bfloat16).astype(jnp.float32),
                      W3.astype(jnp.bfloat16).astype(jnp.float32), b3, R3)
    assert out3.shape == (B3, K3, L3)
    assert jnp.allclose(out3, ref3, atol=5e-3, rtol=5e-3), "test3 mismatch"

    print("KERNEL_OK")
</pallas_src>

<mosaic_0001>
module attributes {stable_mosaic.version = 11 : i64} {
  func.func @_ar_kernel(%arg0: i32, %arg1: i32, %arg2: memref<1x8x16xf32, #tpu.memory_space<vmem>>, %arg3: memref<8x8xf32, #tpu.memory_space<vmem>>, %arg4: memref<8x1xf32, #tpu.memory_space<vmem>>, %arg5: memref<1x8x16xf32, #tpu.memory_space<vmem>>) attributes {dimension_semantics = [#tpu.dimension_semantics<parallel>, #tpu.dimension_semantics<parallel>], iteration_bounds = array<i64: 2, 1>, scalar_prefetch = 0 : i64, scratch_operands = 0 : i64, tpu.core_type = #tpu.core_type<tc>, window_params = [{transform_indices = @transform_0, window_bounds = array<i64: 1, 8, 16>}, {pipeline_mode = #tpu.pipeline_mode<synchronous>, transform_indices = @transform_1, window_bounds = array<i64: 8, 8>}, {pipeline_mode = #tpu.pipeline_mode<synchronous>, transform_indices = @transform_2, window_bounds = array<i64: 8, 1>}, {transform_indices = @transform_3, window_bounds = array<i64: 1, 8, 16>}]} {
    %c0 = arith.constant 0 : index
    %c0_0 = arith.constant 0 : index
    %c0_1 = arith.constant 0 : index
    %0 = vector.load %arg2[%c0, %c0_0, %c0_1] : memref<1x8x16xf32, #tpu.memory_space<vmem>>, vector<1x8x16xf32>
    %cst = arith.constant 0.000000e+00 : f32
    %1 = vector.broadcast %cst : f32 to vector<1x8x128xf32>
    %2 = tpu.concatenate %1, %0 in 2 : vector<1x8x128xf32>, vector<1x8x16xf32> -> vector<1x8x144xf32>
    %3 = vector.extract_strided_slice %2 {offsets = [0, 0, 127], sizes = [1, 8, 16], strides = [1, 1, 1]} : vector<1x8x144xf32> to vector<1x8x16xf32>
    %c0_2 = arith.constant 0 : index
    %c0_3 = arith.constant 0 : index
    %4 = vector.load %arg3[%c0_2, %c0_3] : memref<8x8xf32, #tpu.memory_space<vmem>>, vector<8x8xf32>
    %c0_4 = arith.constant 0 : index
    %c0_5 = arith.constant 0 : index
    %5 = vector.load %arg4[%c0_4, %c0_5] : memref<8x1xf32, #tpu.memory_space<vmem>>, vector<8x1xf32>
    %6 = vector.shape_cast %3 : vector<1x8x16xf32> to vector<8x16xf32>
    %cst_6 = arith.constant dense<0.000000e+00> : vector<8x16xf32>
    %7 = tpu.matmul %4, %6, %cst_6 {dimension_numbers = #tpu.dot_dimension_numbers<[1], [0], [0], [1], [0, 0, 1, 1], [], []>} : vector<8x8xf32>, vector<8x16xf32>, vector<8x16xf32> -> vector<8x16xf32>
    %8 = vector.broadcast %5 : vector<8x1xf32> to vector<8x16xf32>
    %9 = arith.addf %7, %8 : vector<8x16xf32>
    %c0_i32 = arith.constant 0 : i32
    %10 = arith.cmpi eq, %arg1, %c0_i32 : i32
    %11 = arith.extui %10 : i1 to i32
    %c0_i32_7 = arith.constant 0 : i32
    %12 = arith.cmpi ne, %11, %c0_i32_7 : i32
    scf.if %12 {
      %16 = tpu.iota {dimensions = array<i32: 1>} : vector<8x16xi32>
      %c1_i32 = arith.constant 1 : i32
      %17 = vector.broadcast %c1_i32 : i32 to vector<8x16xi32>
      %18 = arith.cmpi sge, %16, %17 : vector<8x16xi32>
      %cst_10 = arith.constant 0.000000e+00 : f32
      %19 = vector.broadcast %cst_10 : f32 to vector<8x16xf32>
      %20 = arith.select %18, %9, %19 : vector<8x16xi1>, vector<8x16xf32>
      %c0_11 = arith.constant 0 : index
      %c0_12 = arith.constant 0 : index
      %c0_13 = arith.constant 0 : index
      %21 = vector.load %arg5[%c0_11, %c0_12, %c0_13] : memref<1x8x16xf32, #tpu.memory_space<vmem>>, vector<1x8x16xf32>
      %22 = vector.shape_cast %21 : vector<1x8x16xf32> to vector<8x16xf32>
      %23 = vector.shape_cast %20 : vector<8x16xf32> to vector<1x8x16xf32>
      tpu.vector_store %arg5[%c0_11, %c0_12, %c0_13], %23 {strides = array<i32>} : memref<1x8x16xf32, #tpu.memory_space<vmem>>, vector<1x8x16xf32>,
    } else {
    }
    %c0_i32_8 = arith.constant 0 : i32
    %13 = arith.cmpi ne, %arg1, %c0_i32_8 : i32
    %14 = arith.extui %13 : i1 to i32
    %c0_i32_9 = arith.constant 0 : i32
    %15 = arith.cmpi ne, %14, %c0_i32_9 : i32
    scf.if %15 {
      %c0_10 = arith.constant 0 : index
      %c0_11 = arith.constant 0 : index
      %c0_12 = arith.constant 0 : index
      %16 = vector.load %arg5[%c0_10, %c0_11, %c0_12] : memref<1x8x16xf32, #tpu.memory_space<vmem>>, vector<1x8x16xf32>
      %17 = vector.shape_cast %16 : vector<1x8x16xf32> to vector<8x16xf32>
      %18 = vector.shape_cast %9 : vector<8x16xf32> to vector<1x8x16xf32>
      tpu.vector_store %arg5[%c0_10, %c0_11, %c0_12], %18 {strides = array<i32>} : memref<1x8x16xf32, #tpu.memory_space<vmem>>, vector<1x8x16xf32>,
    } else {
    }
    return
  }
  func.func @transform_0(%arg0: i32, %arg1: i32) -> (i32, i32, i32) {
    %c0_i32 = arith.constant 0 : i32
    %c0_i32_0 = arith.constant 0 : i32
    return %arg0, %c0_i32, %arg1 : i32, i32, i32
  }
  func.func @transform_1(%arg0: i32, %arg1: i32) -> (i32, i32) {
    %c0_i32 = arith.constant 0 : i32
    %c0_i32_0 = arith.constant 0 : i32
    %c0_i32_1 = arith.constant 0 : i32
    return %c0_i32, %c0_i32_0 : i32, i32
  }
  func.func @transform_2(%arg0: i32, %arg1: i32) -> (i32, i32) {
    %c0_i32 = arith.constant 0 : i32
    %c0_i32_0 = arith.constant 0 : i32
    %c0_i32_1 = arith.constant 0 : i32
    return %c0_i32, %c0_i32_0 : i32, i32
  }
  func.func @transform_3(%arg0: i32, %arg1: i32) -> (i32, i32, i32) {
    %c0_i32 = arith.constant 0 : i32
    %c0_i32_0 = arith.constant 0 : i32
    return %arg0, %c0_i32, %arg1 : i32, i32, i32
  }
}

</mosaic_0001>

<bundles_post_ra>
// kernel: tpu_custom_call.1
= control target key start
LH: loop header
LB: loop body
LE: loop exit
PB: predicated region body
PF: predicated region fallthrough
CT: control target
= control target key end

     0   :  { %8 = vsyncpa [#allocation3], 0  ;;  %s816_s0 = inlined_call_operand.hbm [shape: f32[2,8,16], index: 0, kind: input, shape index: {}]   ;;  %s817_s1 = inlined_call_operand.vmem [shape: f32[8,8], index: 1, kind: input, shape index: {}]   ;;  %s818_s2 = inlined_call_operand.vmem [shape: f32[8,1], index: 2, kind: input, shape index: {}]   ;;  %s819_s3 = inlined_call_operand.hbm [shape: f32[2,8,16], index: 3, kind: output, shape index: {}]  }
   0x1   :  { %10 = vsyncpa [#allocation3 + $0x1], 0 }
   0x2   :  { %11 = vsyncpa [#allocation4], 0 }
   0x3   :  { %13 = vsyncpa [#allocation4 + $0x1], 0  ;;  %s634_s12 = smov 0   ;;  %s636_s13 = smov 0  }
   0x4   :  { %s638_s14 = smov 0   ;;  %s640_s15 = smov 0  }
   0x5   :  { %s642_s16 = smov 0   ;;  %s644_s17 = smov 0  }
   0x6 LB: > { %s405_s18 = sadd.s32 4294967295, %s606_s17   ;;  %s406_s19 = sadd.s32 4294967294, %s606_s17   ;;  %s606_s17 = sphi %s644_s17, %s19_s17   ;;  %s602_s16 = sphi %s642_s16, %s835_s16   ;;  %s598_s15 = sphi %s640_s15, %s834_s15   ;;  %s594_s14 = sphi %s638_s14, %s833_s14   ;;  %s590_s13 = sphi %s636_s13, %s832_s13   ;;  %s586_s12 = sphi %s634_s12, %s831_s12  }
   0x7   : > { %s31_s20 = sadd.s32 1, %s602_s16  ;;  %s40_s21 = sadd.s32 1, %s594_s14 }
   0x8   : > { %p33_p0 = scmp.ge.s32.totalorder %s31_s20, 2  ;;  %p47_p1 = scmp.ne.s32.totalorder %s594_s14, %s590_s13 }
   0x9   : > { %p48_p2 = scmp.eq.s32.totalorder %s606_s17, 0  ;;  %p53_p3 = scmp.ne.s32.totalorder %s590_s13, %s586_s12 }
   0xa   : > { %s837_s20 = smov (%p33_p0, %s31_s20), 0  ;;  %p54_p5 = scmp.eq.s32.totalorder %s405_s18, 0 }
   0xb   : > { %p675_p4 = por %p48_p2, %p47_p1  ;;  %s35_s23 = ssub.s32 %s602_s16, %s837_s20 }
   0xc   : > { %p121_p6 = scmp.eq.s32.totalorder %s405_s18, 1  ;;  %p38_p7 = scmp.eq.s32.totalorder %s35_s23, 0 }
   0xd   : > { %p681_p8 = por %p54_p5, %p53_p3  ;;  %p127_p10 = scmp.eq.s32.totalorder %s406_s19, 1 }
   0xe   : > { %p685_p9 = por %p121_p6, %p47_p1  ;;  %p438_p13 = scmp.lt.s32.totalorder %s606_s17, 2 }
   0xf   : > { %s690_s26 = scalar_select %p38_p7, %s594_s14, %s40_s21  }
  0x10   : > { %s823_s25 = scalar_select %p685_p9, 1, 0 }
  0x11   : > { %p692_p11 = por %p127_p10, %p53_p3  ;;  %s153_s28 = sand.u32 1, %s594_s14  }
  0x12   : > { %s409_s29 = sshll.u32 %s153_s28, 3  ;;  %s410_s30 = sshll.u32 %s602_s16, 7 }
  0x13   : > { %s824_s27 = scalar_select %p692_p11, 1, 0 }
  0x14   : > { %s703_s6 = scalar_lea.hbm %s816_s0, %s410_s30  ;;  %s157_s7 = scalar_lea.vmem [#allocation2], %s409_s29 }
  0x15   : > { %s165_s8 = sshll.u32 %s157_s7, 4  ;;  %p709_p0 = pnand %p438_p13, %p675_p4  ;;  %s705_s8 = int_to_ptr.vmem [resolvable:$true] %s165_s8 }
  0x16   : > { %s154_s10 = scalar_lea.sflag [#allocation3], %s153_s28  ;;  %s494_s11 = scalar_lea.hbm %s703_s6, 128 }
  0x17   : > { %p495_p3 = scmp.ne.s32.totalorder %s703_s6, %s494_s11  ;;  %p496_p5 = pneg %p709_p0 }
  0x18   : > { %s499_s21 = scalar_lea.hbm %s816_s0, 256  ;;  %p500_p4 = scmp.lt.u32.totalorder %s703_s6, %s816_s0 }
  0x19   : > { %p497_p6 = pnand %p496_p5, %p495_p3  ;;  %p501_p10 = scmp.lt.u32.totalorder %s499_s21, %s494_s11 }
  0x1a   : > { %p503_p12 = scmp.lt.u32.totalorder %s494_s11, %s703_s6 }
  0x1b   : > { %p498_p7 = pneg %p497_p6  ;;  %p502_p13 = por %p501_p10, %p500_p4 }
  0x1d   : > { %p504_p1 = por %p503_p12, %p502_p13 }
  0x1f   : > { %p505_p2 = pnand %p504_p1, %p498_p7 }
  0x21   : > { %508 = shalt.err (!%p505_p2)
}
  0x22   : > { %s509_s28 = scalar_lea.vmem %s705_s8, 128  ;;  %s608_s29 = smov [#allocation2]  }
  0x23   : > { %p510_p3 = scmp.ne.s32.totalorder %s705_s8, %s509_s28  ;;  %s514_s30 = sshll.u32 %s608_s29, 4  ;;  %s515_s30 = int_to_ptr.vmem [resolvable:$false] %s514_s30 }
  0x24   : > { %s516_s4 = scalar_lea.vmem %s515_s30, 256  ;;  %p517_p9 = scmp.lt.s32.totalorder %s705_s8, %s515_s30 }
  0x25   : > { %p512_p6 = pnand %p510_p3, %p496_p5  ;;  %p518_p4 = scmp.lt.s32.totalorder %s516_s4, %s509_s28 }
  0x27   : > { %p513_p11 = pneg %p512_p6  ;;  %p519_p10 = por %p518_p4, %p517_p9 }
  0x29   : > { %p520_p12 = pnand %p519_p10, %p513_p11 }
  0x2b   : > { %523 = shalt.err (!%p520_p12)
}
  0x2c   : > { %433 = dma.hbm_to_vmem [thread:$0]  (!%p709_p0), %s703_s6, 128, %s705_s8, %s154_s10  }
  0x2d   : > { %p826_p1 = scmp.lt.s32.totalorder %s606_s17, 3  ;;  %p827_p2 = scmp.ge.s32.totalorder %s606_s17, 1 }
  0x2f   : > { %p171_p5 = pnand %p827_p2, %p826_p1 }
  0x30   : > { %s745_s5 = sand.u32 (!%p171_p5), 1, %s590_s13  }
  0x31   : > { %174 = sbr.rel (%p171_p5) target bundleno = 408 (0x198), region = 32  ;;  %s412_s7 = sshll.u32 (!%p171_p5), %s745_s5, 3 }
  0x32   : > { %s177_s11 = scalar_lea.sflag (!%p171_p5), [#allocation3], %s745_s5  ;;  %s180_s9 = scalar_lea.vmem (!%p171_p5), [#allocation2], %s412_s7 }
  0x38   : > { %577 = dma.done.wait (%p681_p8), %s177_s11, 128  }
  0x39   : > { %579 = vsyncadd (%p681_p8), %s177_s11, 4294967168  ;;  %v609_v0 = vmov 0.0   ;;  %s610_s6 = smov 1   ;;  %vm611_vm0 = vmmov 0   ;;  %v612_v1 = vmov 0   ;;  %v203_v2 = vld [vmem:[%s180_s9] sm:$0xff]  ;;  %v298_v8 = vlaneseq }
  0x3a   : > { %213 = vrot.lane.b32.xlu0 %v609_v0, %s610_s6  ;;  %421 = vmatprep.subr.mxu0 %v609_v0  ;;  %v205_v3 = vld [vmem:[%s818_s2] sm:$0xff]  ;;  %vm217_vm1 = vcmask 7168   ;;  %vm220_vm2 = vcmask 64512   ;;  %s416_s19 = sshll.u32 %s598_s15, 7  ;;  %s202_s21 = scalar_lea.vmem [#allocation5], %s412_s7  ;;  %vm302_vm4 = vcmask 130048  }
  0x3b   : > { %423 = vmatprep.mubr.msk.f32.mxu0 %vm611_vm0, %v609_v0  ;;  %492 = vset.pattern.permute.xlu1 %v612_v1  ;;  %v204_v6 = vld [vmem:[%s817_s1] sm:$0xff]  ;;  %v299_v9 = vand.u32 127, %v298_v8  ;;  %s325_s22 = sshll.u32 %s202_s21, 4  ;;  %s767_s29 = scalar_lea.hbm %s819_s3, %s416_s19  ;;  %s769_s22 = int_to_ptr.vmem [resolvable:$true] %s325_s22 }
  0x3c   : > { %493 = vset.pattern.permute.xlu0 %v612_v1  ;;  %208 = vperm.xlu1 %492, %v205_v3   ;;  %s311_s15 = scalar_lea.sflag [#allocation4], %s745_s5  ;;  %s524_s30 = scalar_lea.vmem %s769_s22, 128 }
  0x3d   : > { %vm300_vm3 = vcmp.ge.s32.totalorder %v299_v9, 1  ;;  %p525_p8 = scmp.ne.s32.totalorder %s769_s22, %s524_s30  ;;  %p828_p9 = scmp.ne.s32.totalorder %s823_s25, 0 }
  0x3e   : > { %215 = vrot.lane.b32.xlu0 %v203_v2, %s610_s6  ;;  %s613_s4 = smov [#allocation5]  }
  0x3f   : > { %p526_p11 = pnand %p525_p8, %p828_p9  ;;  %s528_s7 = sshll.u32 %s613_s4, 4  ;;  %s529_s7 = int_to_ptr.vmem [resolvable:$false] %s528_s7 }
  0x40   : > { %s530_s11 = scalar_lea.vmem %s529_s7, 256  ;;  %p531_p7 = scmp.lt.s32.totalorder %s769_s22, %s529_s7 }
  0x41   : > { %p527_p0 = pneg %p526_p11  ;;  %p532_p13 = scmp.lt.s32.totalorder %s530_s11, %s524_s30 }
  0x43   : > { %p533_p3 = por %p532_p13, %p531_p7 }
  0x45   : > { %p534_p6 = pnand %p533_p3, %p527_p0 }
  0xac   : > { %v214_v4 = vpop.permute.xlu0 %213 }
  0xb0   : > { %v216_v5 = vpop.permute.xlu0 %215 }
  0xb1   : > { %v218_v7 = vsel %vm217_vm1, %v214_v4, %v216_v5 }
  0xb2   : > { %422 = vmatpush3.msra.mxu0 %v218_v7 }
  0xb3   : > { %424 = vmatmul.mubr.msk.f32.vlgmr.msra.gmra.mrb[0].mxu0 %vm220_vm2, %v204_v6 }
  0xbb   : > { %v209_v10 = vpop.permute.xlu1 %208 }
 0x186   : > { %v290_v11 = vpop.f32.mrb[0].mxu0 }
 0x187   : > { %v291_v12 = vadd.f32 %v290_v11, %v209_v10  ;;  %v425_v13 = vpop.f32.mrb[1].mxu0 }
 0x189   : > { %v301_v14 = vsel %vm300_vm3, %v291_v12, 0.0 }
 0x18a   : > { %303 = vst.msk [vmem:[%s202_s21] sm:$0xff] %vm302_vm4, %v301_v14 }
 0x18b   : > { %537 = shalt.err (!%p534_p6)
}
 0x18c   : > { %s538_s5 = scalar_lea.hbm %s767_s29, 128  ;;  %s542_s8 = scalar_lea.hbm %s819_s3, 256 }
 0x18d   : > { %p539_p4 = scmp.ne.s32.totalorder %s767_s29, %s538_s5  ;;  %p543_p1 = scmp.lt.u32.totalorder %s767_s29, %s819_s3 }
 0x18e   : > { %p544_p2 = scmp.lt.u32.totalorder %s542_s8, %s538_s5  ;;  %p546_p8 = scmp.lt.u32.totalorder %s538_s5, %s767_s29 }
 0x18f   : > { %p540_p10 = pnand %p539_p4, %p828_p9 }
 0x190   : > { %p545_p5 = por %p544_p2, %p543_p1 }
 0x191   : > { %p541_p12 = pneg %p540_p10 }
 0x192   : > { %p547_p11 = por %p546_p8, %p545_p5 }
 0x194   : > { %p548_p0 = pnand %p547_p11, %p541_p12 }
 0x196   : > { %551 = shalt.err (!%p548_p0)
}
 0x197   : > { %428 = dma.vmem_to_hbm [thread:$0]  (%p828_p9), %s769_s22, 128, %s767_s29, %s311_s15  }
 0x198 PF: > { %s337_s18 = sand.u32 1, %s586_s12   ;;  %p829_p7 = scmp.ne.s32.totalorder %s824_s27, 0 }
 0x199   : > { %p830_p13 = scmp.ge.s32.totalorder %s606_s17, 2  ;;  %s338_s19 = scalar_lea.sflag [#allocation4], %s337_s18 }
 0x19b   : > { %p435_p3 = pnand %p830_p13, %p829_p7 }
 0x19d   : > { %581 = dma.done.wait (!%p435_p3), %s338_s19, 128  }
 0x19e   : > { %583 = vsyncadd (!%p435_p3), %s338_s19, 4294967168  ;;  %s19_s17 = sadd.s32 1, %s606_s17   ;;  %s831_s12 = smov %s590_s13 }
 0x19f   : > { %p16_p6 = scmp.ge.s32.totalorder %s19_s17, 4   ;;  %s832_s13 = smov %s594_s14 }
 0x1a0   : > { %s833_s14 = smov %s690_s26  ;;  %s834_s15 = smov %s602_s16 }
 0x1a1   : > { %s835_s16 = smov %s837_s20  ;;  %18 = sbr.rel (!%p16_p6) target bundleno = 6 (0x6), region = 85 }
 0x1a8   :  { %343 = vsyncpa [#allocation3], 1 }
 0x1a9   :  { %345 = vsyncpa [#allocation3 + $0x1], 1 }
 0x1aa   :  { %346 = vsyncpa [#allocation4], 1 }
 0x1ab   :  { %348 = vsyncpa [#allocation4 + $0x1], 1 }

</bundles_post_ra>
